<compile_context>
chip_gen: v7x
topology: tpu7x:2x2x1
jax: 0.10.0
libtpu: 0.0.40
codegen_flags: <defaults>
</compile_context>

<pallas_src>
import math

import jax
import jax.numpy as jnp
from jax.experimental import pallas as pl
from jax.experimental.pallas import tpu as pltpu

_LOG2PI = math.log(2.0 * math.pi)

LANES = 128                       # lane width of the flattened 2-D view
_F32_TEMP_CAP_BYTES = 4 << 20     # cap on per-block f32 temporaries in-kernel


def _cdiv(a, b):
    return (a + b - 1) // b


def _round_up(a, b):
    return _cdiv(a, b) * b


# ---------------------------------------------------------------------------
# Device-dependent sizing
# ---------------------------------------------------------------------------
def _device_kind() -> str:
    try:
        return jax.devices()[0].device_kind.lower()
    except Exception:
        return ""


def _num_tensorcores() -> int:
    """TensorCores one pallas_call can spread a 'parallel' grid axis over.

    1 on single-TC chips (v5e/v6e); 2 on megacore (v4/v5p) and v7x.
    """
    kind = _device_kind()
    if any(t in kind for t in ("v4", "v5p", "v7", "tpu7")):
        return 2
    return 1


def _target_block_bytes() -> int:
    """Per-input block bytes: bigger where HBM is faster (fixed ~0.35us
    per-step overhead is a larger fraction of a faster DMA)."""
    kind = _device_kind()
    if any(t in kind for t in ("v6", "v7", "tpu7")):
        # 3 inputs x 2 buffers x 2 MiB = 12 MiB (+ f32 temps) < 32 MiB default
        # scoped VMEM on v6e/v7x, no vmem_limit_bytes bump required.
        return 2 << 20
    # v5e (16 MiB default scoped VMEM) and unknown chips: stay at 1 MiB.
    return 1 << 20


# ---------------------------------------------------------------------------
# Kernels: accumulate per-vreg partial sums into a per-core (8, 128) output
# block that stays resident across the reduction grid axis.
# ---------------------------------------------------------------------------
def _accumulate(acc_ref, term, tr):
    if tr % 8 == 0:
        # (tr,128)->(tr//8,8,128) keeps the (8,128) tile intact; the sum over
        # the leading axis is pure per-vreg VPU adds (no XLU, no VMEM temp).
        acc_ref[...] += jnp.sum(term.reshape(-1, 8, LANES), axis=0)
    else:
        # Tiny full-array case (tr == total rows < 8): one sublane reduce.
        acc_ref[0:1, :] += jnp.sum(term, axis=0, keepdims=True)


def _row_mask(term, bpc, tr, valid_rows):
    start = (pl.program_id(0) * bpc + pl.program_id(1)) * tr
    rows = jax.lax.broadcasted_iota(jnp.int32, (tr, 1), 0)
    return jnp.where(rows + start < valid_rows, term, 0.0)


def _make_gauss_kernel(tr, bpc, valid_rows):
    """valid_rows=None -> grid covers the array exactly, no masking needed."""

    def kernel(x_ref, m_ref, lv_ref, acc_ref):
        i = pl.program_id(1)

        @pl.when(i == 0)
        def _():
            acc_ref[...] = jnp.zeros_like(acc_ref)

        x = x_ref[...].astype(jnp.float32)
        m = m_ref[...].astype(jnp.float32)
        lv = lv_ref[...].astype(jnp.float32)
        d = x - m
        # log(2*pi) hoisted to the epilogue; exp(-lv) lands on the EUP slot.
        term = lv + d * d * jnp.exp(-lv)
        if valid_rows is not None:
            term = _row_mask(term, bpc, tr, valid_rows)
        _accumulate(acc_ref, term, tr)

    return kernel


def _make_mse_kernel(tr, bpc, valid_rows):
    def kernel(x_ref, m_ref, acc_ref):
        i = pl.program_id(1)

        @pl.when(i == 0)
        def _():
            acc_ref[...] = jnp.zeros_like(acc_ref)

        d = x_ref[...].astype(jnp.float32) - m_ref[...].astype(jnp.float32)
        term = d * d
        if valid_rows is not None:
            term = _row_mask(term, bpc, tr, valid_rows)
        _accumulate(acc_ref, term, tr)

    return kernel


# ---------------------------------------------------------------------------
# Reduction driver
# ---------------------------------------------------------------------------
def _as_lane_view(a, n, n128):
    """View `a` as (n128//128, 128) without copying when n % 128 == 0."""
    if n128 == n:
        return a.reshape(n128 // LANES, LANES)      # pure reshape: no copy
    # TODO(synk): rare non-multiple-of-128 sizes take one minimal pad copy
    # (<=127 zeros, exactly neutral for both objectives).
    flat = jnp.pad(a.reshape(-1), (0, n128 - n))
    return flat.reshape(n128 // LANES, LANES)


def _run_reduction(make_kernel, arrays):
    """f32 sum of the kernel's per-element term over all real elements."""
    n = arrays[0].size
    n128 = _round_up(n, LANES)
    r = n128 // LANES                               # rows of the (R, 128) view

    itemsizes = [jnp.dtype(a.dtype).itemsize for a in arrays]
    sub = 32 // min(itemsizes)                      # sublane multiple legal for all inputs
    ncores = _num_tensorcores()

    # Block rows: byte-targeted per input dtype, capped so in-kernel f32
    # temporaries stay bounded, rounded to the sublane multiple, and no larger
    # than one core's share of the rows.
    cand = _target_block_bytes() // (LANES * max(itemsizes))
    cand = min(cand, _F32_TEMP_CAP_BYTES // (LANES * 4))
    cand = max(sub, (cand // sub) * sub)
    cand = min(cand, _round_up(_cdiv(r, ncores), sub))
    tr = r if cand >= r else cand                   # never exceed the array rows

    nb = _cdiv(r, tr)                               # real blocks
    bpc = _cdiv(nb, ncores)                         # blocks per core (grid extent)
    # Mask when the last block overhangs the rows, or when nb doesn't split
    # evenly across cores ("phantom" blocks on the trailing core).
    needs_mask = (r % tr != 0) or (ncores * bpc != nb)

    views = [_as_lane_view(a, n, n128) for a in arrays]

    last_block = nb - 1

    def index_map(c, i, _bpc=bpc, _last=last_block):
        # Clamp so phantom blocks re-read the last real block (their
        # contribution is zeroed by the in-kernel row mask).
        return (jnp.minimum(c * _bpc + i, _last), 0)

    in_specs = [pl.BlockSpec((tr, LANES), index_map) for _ in arrays]
    kernel = make_kernel(tr, bpc, r if needs_mask else None)

    partials = pl.pallas_call(
        kernel,
        out_shape=jax.ShapeDtypeStruct((ncores * 8, LANES), jnp.float32),
        grid_spec=pltpu.PrefetchScalarGridSpec(
            num_scalar_prefetch=0,
            grid=(ncores, bpc),
            in_specs=in_specs,
            # Per-core (8,128) f32 partial-sum slot, resident across the
            # reduction axis.
            out_specs=pl.BlockSpec((8, LANES), lambda c, i: (c, 0)),
        ),
        compiler_params=pltpu.CompilerParams(
            # TODO(synk): on v7x evaluate pltpu.CORE_PARALLEL for the leading
            # axis to guarantee both TensorCores stream concurrently.
            dimension_semantics=("parallel", "arbitrary")),
    )(*views)
    # Tiny (ncores*8, 128) finalize reduce in XLA.
    return jnp.sum(partials)


# ---------------------------------------------------------------------------
# Wrappers (jitted so the reshapes / epilogue fuse with the Pallas call)
# ---------------------------------------------------------------------------
@jax.jit
def loglikelihood_gaussian_pallas(x, mean, logvar):
    x, mean, logvar = jnp.broadcast_arrays(x, mean, logvar)
    B = x.shape[0]
    F = x.size // B
    s = _run_reduction(_make_gauss_kernel, [x, mean, logvar])
    # -0.5 * sum_f mean_b(log2pi + lv + d^2/exp(lv))
    #   = -0.5*F*log2pi - 0.5/B * sum_all(lv + d^2*exp(-lv))
    return jnp.float32(-0.5 * F * _LOG2PI) - (0.5 / B) * s


@jax.jit
def neg_mse_pallas(x, mean):
    x, mean = jnp.broadcast_arrays(x, mean)
    B = x.shape[0]
    s = _run_reduction(_make_mse_kernel, [x, mean])
    return -s / B


class LogLikelihoodGaussian:
    """JAX/Pallas port of models/objective.py::LogLikelihoodGaussian."""

    def __call__(self, x, mean, logvar=None):
        if logvar is not None:
            return loglikelihood_gaussian_pallas(x, mean, logvar)
        elif isinstance(mean, dict):
            return loglikelihood_gaussian_pallas(x, mean['mean'], mean['logvar'])
        else:
            return neg_mse_pallas(x, mean)


# ---------------------------------------------------------------------------
# Reference (pure JAX) for validation
# ---------------------------------------------------------------------------
def _ref_gauss(x, mean, logvar):
    term = _LOG2PI + logvar + (x - mean) ** 2 / jnp.exp(logvar)
    return -0.5 * jnp.sum(jnp.mean(term, axis=0))


def _ref_mse(x, mean):
    return -jnp.sum((x - mean) ** 2) / x.shape[0]


if __name__ == "__main__":
    key = jax.random.PRNGKey(0)
    k1, k2, k3 = jax.random.split(key, 3)

    mod = LogLikelihoodGaussian()

    # Small, module-consistent shapes: batch=2, channels=4, spatial=16x16.
    B, C, H, W = 2, 4, 16, 16
    x = jax.random.normal(k1, (B, C, H, W), dtype=jnp.float32)
    mean = jax.random.normal(k2, (B, C, H, W), dtype=jnp.float32)
    logvar = 0.5 * jax.random.normal(k3, (B, C, H, W), dtype=jnp.float32)

    # Mode 1: explicit logvar (zero-copy aligned path).
    out1 = jax.block_until_ready(mod(x, mean, logvar))
    ref1 = _ref_gauss(x, mean, logvar)
    assert jnp.allclose(out1, ref1, rtol=1e-5, atol=1e-4), (out1, ref1)

    # Mode 2: dict of {'mean', 'logvar'}.
    out2 = jax.block_until_ready(mod(x, {'mean': mean, 'logvar': logvar}))
    assert jnp.allclose(out2, ref1, rtol=1e-5, atol=1e-4), (out2, ref1)

    # Mode 3: no logvar -> -MSE(sum) / batch.
    out3 = jax.block_until_ready(mod(x, mean))
    ref3 = _ref_mse(x, mean)
    assert jnp.allclose(out3, ref3, rtol=1e-5, atol=1e-4), (out3, ref3)

    # Mode 4: non-128-divisible size (minimal tail pad + masked tiny block).
    xs = jax.random.normal(k1, (2, 3, 7, 5), dtype=jnp.float32)
    ms = jax.random.normal(k2, (2, 3, 7, 5), dtype=jnp.float32)
    lvs = 0.3 * jax.random.normal(k3, (2, 3, 7, 5), dtype=jnp.float32)
    out4 = jax.block_until_ready(mod(xs, ms, lvs))
    ref4 = _ref_gauss(xs, ms, lvs)
    assert jnp.allclose(out4, ref4, rtol=1e-5, atol=1e-4), (out4, ref4)

    # Mode 5: bf16 activations stream directly (f32 cast happens on the VPU
    # inside the kernel; no wrapper-side upcast).
    xb, mb, lvb = (x.astype(jnp.bfloat16), mean.astype(jnp.bfloat16),
                   logvar.astype(jnp.bfloat16))
    out5 = jax.block_until_ready(mod(xb, mb, lvb))
    ref5 = _ref_gauss(xb.astype(jnp.float32), mb.astype(jnp.float32),
                      lvb.astype(jnp.float32))
    assert jnp.allclose(out5, ref5, rtol=1e-4, atol=1e-3), (out5, ref5)

    # Mode 6: multi-block reduction with a ragged last block (zero-copy
    # reshape; the in-kernel row mask handles the overhang).
    kb1, kb2, kb3 = jax.random.split(jax.random.PRNGKey(1), 3)
    shape = (2, 129, 32, 32)            # 264192 elems = 2064 rows of 128
    xl = jax.random.normal(kb1, shape, dtype=jnp.float32)
    ml = jax.random.normal(kb2, shape, dtype=jnp.float32)
    lvl = 0.2 * jax.random.normal(kb3, shape, dtype=jnp.float32)
    out6 = jax.block_until_ready(mod(xl, ml, lvl))
    ref6 = _ref_gauss(xl, ml, lvl)
    assert jnp.allclose(out6, ref6, rtol=1e-4, atol=1e-2), (out6, ref6)

    print("KERNEL_OK")
</pallas_src>

<mosaic_0001>
module attributes {stable_mosaic.version = 11 : i64} {
  func.func @kernel(%arg0: i32, %arg1: i32, %arg2: memref<16x128xf32, #tpu.memory_space<vmem>>, %arg3: memref<16x128xf32, #tpu.memory_space<vmem>>, %arg4: memref<16x128xf32, #tpu.memory_space<vmem>>, %arg5: memref<8x128xf32, #tpu.memory_space<vmem>>) attributes {dimension_semantics = [#tpu.dimension_semantics<parallel>, #tpu.dimension_semantics<arbitrary>], iteration_bounds = array<i64: 1, 1>, scalar_prefetch = 0 : i64, scratch_operands = 0 : i64, tpu.core_type = #tpu.core_type<tc>, window_params = [{transform_indices = @transform_0, window_bounds = array<i64: 16, 128>}, {transform_indices = @transform_1, window_bounds = array<i64: 16, 128>}, {transform_indices = @transform_2, window_bounds = array<i64: 16, 128>}, {transform_indices = @transform_3, window_bounds = array<i64: 8, 128>}]} {
    %c0_i32 = arith.constant 0 : i32
    %0 = arith.cmpi eq, %arg1, %c0_i32 : i32
    %1 = arith.extui %0 : i1 to i32
    %c0_i32_0 = arith.constant 0 : i32
    %2 = arith.cmpi ne, %1, %c0_i32_0 : i32
    scf.if %2 {
      %cst_11 = arith.constant 0.000000e+00 : f32
      %18 = vector.broadcast %cst_11 : f32 to vector<8x128xf32>
      %c0_12 = arith.constant 0 : index
      %c0_13 = arith.constant 0 : index
      %19 = vector.load %arg5[%c0_12, %c0_13] : memref<8x128xf32, #tpu.memory_space<vmem>>, vector<8x128xf32>
      tpu.vector_store %arg5[%c0_12, %c0_13], %18 {strides = array<i32>} : memref<8x128xf32, #tpu.memory_space<vmem>>, vector<8x128xf32>,
    } else {
    }
    %c0 = arith.constant 0 : index
    %c0_1 = arith.constant 0 : index
    %3 = vector.load %arg2[%c0, %c0_1] : memref<16x128xf32, #tpu.memory_space<vmem>>, vector<16x128xf32>
    %c0_2 = arith.constant 0 : index
    %c0_3 = arith.constant 0 : index
    %4 = vector.load %arg3[%c0_2, %c0_3] : memref<16x128xf32, #tpu.memory_space<vmem>>, vector<16x128xf32>
    %c0_4 = arith.constant 0 : index
    %c0_5 = arith.constant 0 : index
    %5 = vector.load %arg4[%c0_4, %c0_5] : memref<16x128xf32, #tpu.memory_space<vmem>>, vector<16x128xf32>
    %6 = arith.subf %3, %4 : vector<16x128xf32>
    %7 = arith.mulf %6, %6 : vector<16x128xf32>
    %cst = arith.constant 0.000000e+00 : f32
    %8 = vector.broadcast %cst : f32 to vector<16x128xf32>
    %9 = arith.subf %8, %5 : vector<16x128xf32>
    %10 = math.exp %9 : vector<16x128xf32>
    %11 = arith.mulf %7, %10 : vector<16x128xf32>
    %12 = arith.addf %5, %11 : vector<16x128xf32>
    %c0_6 = arith.constant 0 : index
    %c0_7 = arith.constant 0 : index
    %13 = vector.load %arg5[%c0_6, %c0_7] : memref<8x128xf32, #tpu.memory_space<vmem>>, vector<8x128xf32>
    %14 = vector.shape_cast %12 : vector<16x128xf32> to vector<2x8x128xf32>
    %cst_8 = arith.constant dense<0.000000e+00> : vector<8x128xf32>
    %15 = vector.multi_reduction <add>, %14, %cst_8 [0] : vector<2x8x128xf32> to vector<8x128xf32>
    %16 = arith.addf %13, %15 : vector<8x128xf32>
    %c0_9 = arith.constant 0 : index
    %c0_10 = arith.constant 0 : index
    %17 = vector.load %arg5[%c0_9, %c0_10] : memref<8x128xf32, #tpu.memory_space<vmem>>, vector<8x128xf32>
    tpu.vector_store %arg5[%c0_9, %c0_10], %16 {strides = array<i32>} : memref<8x128xf32, #tpu.memory_space<vmem>>, vector<8x128xf32>,
    return
  }
  func.func @transform_0(%arg0: i32, %arg1: i32) -> (i32, i32) {
    %c1_i32 = arith.constant 1 : i32
    %0 = arith.muli %arg0, %c1_i32 : i32
    %1 = arith.addi %0, %arg1 : i32
    %c0_i32 = arith.constant 0 : i32
    %2 = arith.minsi %1, %c0_i32 : i32
    %c0_i32_0 = arith.constant 0 : i32
    %c0_i32_1 = arith.constant 0 : i32
    return %2, %c0_i32_0 : i32, i32
  }
  func.func @transform_1(%arg0: i32, %arg1: i32) -> (i32, i32) {
    %c1_i32 = arith.constant 1 : i32
    %0 = arith.muli %arg0, %c1_i32 : i32
    %1 = arith.addi %0, %arg1 : i32
    %c0_i32 = arith.constant 0 : i32
    %2 = arith.minsi %1, %c0_i32 : i32
    %c0_i32_0 = arith.constant 0 : i32
    %c0_i32_1 = arith.constant 0 : i32
    return %2, %c0_i32_0 : i32, i32
  }
  func.func @transform_2(%arg0: i32, %arg1: i32) -> (i32, i32) {
    %c1_i32 = arith.constant 1 : i32
    %0 = arith.muli %arg0, %c1_i32 : i32
    %1 = arith.addi %0, %arg1 : i32
    %c0_i32 = arith.constant 0 : i32
    %2 = arith.minsi %1, %c0_i32 : i32
    %c0_i32_0 = arith.constant 0 : i32
    %c0_i32_1 = arith.constant 0 : i32
    return %2, %c0_i32_0 : i32, i32
  }
  func.func @transform_3(%arg0: i32, %arg1: i32) -> (i32, i32) {
    %c0_i32 = arith.constant 0 : i32
    %c0_i32_0 = arith.constant 0 : i32
    return %arg0, %c0_i32 : i32, i32
  }
}

</mosaic_0001>

<bundles_post_ra>
// kernel: loglikelihood_gaussian_pallas.1
= control target key start
LH: loop header
LB: loop body
LE: loop exit
PB: predicated region body
PF: predicated region fallthrough
CT: control target
= control target key end

     0   :  { %s207_s2 = inlined_call_operand.vmem [shape: f32[16,128], index: 2, kind: input, shape index: {}]   ;;  %s208_s0 = inlined_call_operand.vmem [shape: f32[16,128], index: 0, kind: input, shape index: {}]   ;;  %s209_s1 = inlined_call_operand.vmem [shape: f32[16,128], index: 1, kind: input, shape index: {}]   ;;  %s210_s3 = inlined_call_operand.vmem [shape: f32[8,128], index: 3, kind: output, shape index: {}]  }
   0x1   :  { %v119_v0 = vld [vmem:[%s207_s2] sm:$0xff]  ;;  %v120_v1 = vld [vmem:[%s207_s2 + $0x8] sm:$0xff] }
   0x2   :  { %v125_v2 = vsub.f32 0.0, %v119_v0  ;;  %v126_v3 = vsub.f32 0.0, %v120_v1  ;;  %v115_v6 = vld [vmem:[%s208_s0] sm:$0xff]  ;;  %v116_v8 = vld [vmem:[%s208_s0 + $0x8] sm:$0xff] }
   0x3   :  { %v117_v7 = vld [vmem:[%s209_s1] sm:$0xff]  ;;  %v118_v9 = vld [vmem:[%s209_s1 + $0x8] sm:$0xff] }
   0x4   :  { %v127_v4 = vmul.f32 1.442695, %v125_v2  ;;  %v129_v5 = vmul.f32 1.442695, %v126_v3  ;;  %v121_v10 = vsub.f32 %v115_v6, %v117_v7  ;;  %v122_v11 = vsub.f32 %v116_v8, %v118_v9 }
   0x6   :  { %162 = vpow2.f32 %v127_v4  ;;  %v123_v12 = vmul.f32 %v121_v10, %v121_v10  ;;  %v124_v13 = vmul.f32 %v122_v11, %v122_v11 }
   0x7   :  { %164 = vpow2.f32 %v129_v5 }
  0x10   :  { %v163_v14 = vpop.eup %162 }
  0x11   :  { %v165_v15 = vpop.eup %164  ;;  %v131_v16 = vmul.f32 %v163_v14, %v123_v12 }
  0x12   :  { %v132_v17 = vmul.f32 %v165_v15, %v124_v13 }
  0x13   :  { %v133_v18 = vadd.f32 %v131_v16, %v119_v0 }
  0x14   :  { %v134_v19 = vadd.f32 %v132_v17, %v120_v1 }
  0x16   :  { %v136_v20 = vadd.f32 %v134_v19, %v133_v18 }
  0x18   :  { %138 = vst [vmem:[%s210_s3] sm:$0xff] %v136_v20 }

</bundles_post_ra>
